<compile_context>
chip_gen: v5e
topology: v5e:2x2
jax: 0.10.0
libtpu: 0.0.40
codegen_flags: <defaults>
</compile_context>

<pallas_src>
from functools import partial

import jax
import jax.numpy as jnp
from jax.experimental import pallas as pl
from jax.experimental.pallas import tpu as pltpu

_LANE = 2048           # lane-dense width (multiple of 128)
_ROWS_PER_TILE = 256   # 256 x 2048 x 4B = 2 MiB per f32 tile buffer
_VMEM_LIMIT = 32 * 1024 * 1024


def _fused_update_kernel(lr_ref, z_ref, dz_ref, z_out_ref, dz_out_ref):
    """One (tile_rows, cols) tile:  Z_out = Z + lr*dZ (native dtype);  dZ_out = 0."""
    lr = lr_ref[0]                                   # scalar read from SMEM
    z = z_ref[...]
    dz = dz_ref[...]
    z_out_ref[...] = (z + dz * lr.astype(z.dtype)).astype(z_out_ref.dtype)
    dz_out_ref[...] = jnp.zeros(dz_out_ref.shape, dz_out_ref.dtype)


def _fused_pallas_2d(z2, d2, lr_arr, tile_rows, flops, bytes_accessed):
    """Run the fused update over a 2-D (rows, cols) view; returns (z_new, dz_new)."""
    rows, cols = z2.shape
    tile_rows = min(tile_rows, rows)                 # full block if array is small
    grid = (pl.cdiv(rows, tile_rows),)
    block = (tile_rows, cols)
    idx = lambda i: (i, 0)

    return pl.pallas_call(
        _fused_update_kernel,
        out_shape=(
            jax.ShapeDtypeStruct((rows, cols), z2.dtype),
            jax.ShapeDtypeStruct((rows, cols), d2.dtype),
        ),
        grid_spec=pltpu.PrefetchScalarGridSpec(
            num_scalar_prefetch=0,
            grid=grid,
            in_specs=[
                # lr: whole (1,) array resident in SMEM (no VMEM tile / DMA)
                pl.BlockSpec(memory_space=pltpu.MemorySpace.SMEM),
                pl.BlockSpec(block, idx),
                pl.BlockSpec(block, idx),
            ],
            out_specs=[
                pl.BlockSpec(block, idx),
                pl.BlockSpec(block, idx),
            ],
        ),
        # Z (input 1) updated in place into output 0; dZ (input 2) into output 1.
        input_output_aliases={1: 0, 2: 1},
        compiler_params=pltpu.CompilerParams(
            dimension_semantics=("parallel",),       # megacore sharding on v7x
            vmem_limit_bytes=_VMEM_LIMIT,
        ),
        cost_estimate=pl.CostEstimate(
            flops=flops, transcendentals=0, bytes_accessed=bytes_accessed),
    )(lr_arr, z2, d2)


@partial(jax.jit,
         static_argnames=("lane", "rows_per_tile"),
         donate_argnums=(0, 1))
def update_z_and_zero_dz(Z, dZ, lr, *, lane=_LANE, rows_per_tile=_ROWS_PER_TILE):
    """Fused ForceDirected epoch tail: returns (Z + dZ*lr, zeros_like(dZ)).

    In-place (donated) update of the caller's Z / dZ buffers, single HBM sweep,
    no padding or slice-back copies for ragged sizes.
    """
    assert Z.shape == dZ.shape and Z.dtype == dZ.dtype
    orig_shape = Z.shape
    total = Z.size
    itemsize = Z.dtype.itemsize
    lr_arr = jnp.asarray([lr], dtype=jnp.float32)

    # Tiny input (< one vreg): fixed pallas_call cost dominates -> plain XLA.
    if total < 8 * 128:
        z_new = Z + dZ * jnp.asarray(lr, dtype=Z.dtype)
        return z_new, jnp.zeros_like(dZ)

    flops = 2 * total                      # one mul + one add per element
    bytes_accessed = 4 * total * itemsize  # 2 reads + 2 writes

    if total % lane == 0:
        # Lane-dense fast path: row-major reshape is a free bitcast; every
        # store is a full-width (2048-lane) unmasked vst.
        rows = total // lane
        z2 = Z.reshape(rows, lane)
        d2 = dZ.reshape(rows, lane)
        tile_rows = rows_per_tile
    else:
        # Ragged total: keep native [N, D]-style layout (block last dim == full
        # last dim satisfies the (8,128) rule), tile over rows only.  The
        # trailing partial row block is masked by Pallas — no pad / slice-back.
        cols = orig_shape[-1]
        lead = total // cols
        z2 = Z.reshape(lead, cols)
        d2 = dZ.reshape(lead, cols)
        row_bytes = cols * itemsize
        tile_rows = max(8, ((2 << 20) // row_bytes) // 8 * 8)   # ~2 MiB of rows

    z_new2, dz_new2 = _fused_pallas_2d(z2, d2, lr_arr, tile_rows,
                                       flops, bytes_accessed)
    return z_new2.reshape(orig_shape), dz_new2.reshape(orig_shape)


if __name__ == "__main__":
    key = jax.random.PRNGKey(0)
    kz, kd, k1, k2 = jax.random.split(key, 4)

    # --- lane-dense zero-copy path: 1024 graph nodes embedded in 32 dims -----
    N, D = 1024, 32
    Z = jax.random.normal(kz, (N, D), dtype=jnp.float32)
    dZ = jax.random.normal(kd, (N, D), dtype=jnp.float32)
    lr = 0.5

    # Reference computed BEFORE the call (Z/dZ are donated to the kernel).
    ref = jax.block_until_ready(Z + dZ * lr)

    Z_new, dZ_zeroed = jax.block_until_ready(update_z_and_zero_dz(Z, dZ, lr))
    assert Z_new.shape == (N, D) and Z_new.dtype == jnp.float32
    assert jnp.allclose(Z_new, ref, atol=1e-6, rtol=1e-6)
    assert dZ_zeroed.shape == (N, D) and float(jnp.abs(dZ_zeroed).sum()) == 0.0

    # --- ragged-size path (native [N, D] tiling, no pad / slice-back) --------
    N2, D2 = 100, 48
    Z2 = jax.random.normal(k1, (N2, D2), dtype=jnp.float32)
    dZ2 = jax.random.normal(k2, (N2, D2), dtype=jnp.float32)
    ref2 = jax.block_until_ready(Z2 + dZ2)

    Z2_new, dZ2_zeroed = jax.block_until_ready(update_z_and_zero_dz(Z2, dZ2, 1.0))
    assert jnp.allclose(Z2_new, ref2, atol=1e-6, rtol=1e-6)
    assert float(jnp.abs(dZ2_zeroed).sum()) == 0.0

    print("KERNEL_OK")
</pallas_src>

<mosaic_0001>
module attributes {stable_mosaic.version = 11 : i64} {
  func.func @_fused_update_kernel(%arg0: i32, %arg1: memref<1xf32, #tpu.memory_space<smem>>, %arg2: memref<16x2048xf32, #tpu.memory_space<vmem>>, %arg3: memref<16x2048xf32, #tpu.memory_space<vmem>>, %arg4: memref<16x2048xf32, #tpu.memory_space<vmem>>, %arg5: memref<16x2048xf32, #tpu.memory_space<vmem>>) attributes {dimension_semantics = [#tpu.dimension_semantics<parallel>], iteration_bounds = array<i64: 1>, scalar_prefetch = 0 : i64, scratch_operands = 0 : i64, tpu.core_type = #tpu.core_type<tc>, window_params = [{transform_indices = @transform_0, window_bounds = array<i64: 1>}, {transform_indices = @transform_1, window_bounds = array<i64: 16, 2048>}, {transform_indices = @transform_2, window_bounds = array<i64: 16, 2048>}, {transform_indices = @transform_3, window_bounds = array<i64: 16, 2048>}, {transform_indices = @transform_4, window_bounds = array<i64: 16, 2048>}]} {
    %c0 = arith.constant 0 : index
    %0 = memref.load %arg1[%c0] : memref<1xf32, #tpu.memory_space<smem>>
    %c0_0 = arith.constant 0 : index
    %c0_1 = arith.constant 0 : index
    %1 = vector.load %arg2[%c0_0, %c0_1] : memref<16x2048xf32, #tpu.memory_space<vmem>>, vector<16x2048xf32>
    %c0_2 = arith.constant 0 : index
    %c0_3 = arith.constant 0 : index
    %2 = vector.load %arg3[%c0_2, %c0_3] : memref<16x2048xf32, #tpu.memory_space<vmem>>, vector<16x2048xf32>
    %3 = vector.broadcast %0 : f32 to vector<16x2048xf32>
    %4 = arith.mulf %2, %3 : vector<16x2048xf32>
    %5 = arith.addf %1, %4 : vector<16x2048xf32>
    %c0_4 = arith.constant 0 : index
    %c0_5 = arith.constant 0 : index
    %6 = vector.load %arg4[%c0_4, %c0_5] : memref<16x2048xf32, #tpu.memory_space<vmem>>, vector<16x2048xf32>
    tpu.vector_store %arg4[%c0_4, %c0_5], %5 {strides = array<i32>} : memref<16x2048xf32, #tpu.memory_space<vmem>>, vector<16x2048xf32>,
    %cst = arith.constant 0.000000e+00 : f32
    %7 = vector.broadcast %cst : f32 to vector<16x2048xf32>
    %c0_6 = arith.constant 0 : index
    %c0_7 = arith.constant 0 : index
    %8 = vector.load %arg5[%c0_6, %c0_7] : memref<16x2048xf32, #tpu.memory_space<vmem>>, vector<16x2048xf32>
    tpu.vector_store %arg5[%c0_6, %c0_7], %7 {strides = array<i32>} : memref<16x2048xf32, #tpu.memory_space<vmem>>, vector<16x2048xf32>,
    return
  }
  func.func @transform_0(%arg0: i32) -> i32 {
    %c0_i32 = arith.constant 0 : i32
    %c0_i32_0 = arith.constant 0 : i32
    return %c0_i32 : i32
  }
  func.func @transform_1(%arg0: i32) -> (i32, i32) {
    %c0_i32 = arith.constant 0 : i32
    %c0_i32_0 = arith.constant 0 : i32
    return %arg0, %c0_i32 : i32, i32
  }
  func.func @transform_2(%arg0: i32) -> (i32, i32) {
    %c0_i32 = arith.constant 0 : i32
    %c0_i32_0 = arith.constant 0 : i32
    return %arg0, %c0_i32 : i32, i32
  }
  func.func @transform_3(%arg0: i32) -> (i32, i32) {
    %c0_i32 = arith.constant 0 : i32
    %c0_i32_0 = arith.constant 0 : i32
    return %arg0, %c0_i32 : i32, i32
  }
  func.func @transform_4(%arg0: i32) -> (i32, i32) {
    %c0_i32 = arith.constant 0 : i32
    %c0_i32_0 = arith.constant 0 : i32
    return %arg0, %c0_i32 : i32, i32
  }
}

</mosaic_0001>

<bundles_post_ra>
// kernel: update_z_and_zero_dz.1
= control target key start
LH: loop header
LB: loop body
LE: loop exit
PB: predicated region body
PF: predicated region fallthrough
CT: control target
= control target key end

     0   :  { %v220_v24 = vmov 0.0   ;;  %s699_s0 = inlined_call_operand.<no memory space> [shape: f32[1], index: 0, kind: input, shape index: {}]   ;;  %s700_s1 = inlined_call_operand.vmem [shape: f32[16,2048], index: 1, kind: input, shape index: {}, may-alias: {1,3}]   ;;  %s701_s2 = inlined_call_operand.vmem [shape: f32[16,2048], index: 2, kind: input, shape index: {}, may-alias: {2,4}]   ;;  %s702_s4 = inlined_call_operand.vmem [shape: f32[16,2048], index: 4, kind: output, shape index: {1}, may-alias: {2,4}]   ;;  %s703_s3 = inlined_call_operand.vmem [shape: f32[16,2048], index: 3, kind: output, shape index: {0}, may-alias: {1,3}]  }
   0x1   :  { %v18_v0 = vld [vmem:[%s700_s1] sm:$0xff]  ;;  %v255_v2 = vstv %s699_s0  ;;  %v19_v3 = vld [vmem:[%s700_s1 + $0x8] sm:$0xff]  ;;  %v20_v6 = vld [vmem:[%s700_s1 + $0x10] sm:$0xff] }
   0x2   :  { %v50_v1 = vld [vmem:[%s701_s2] sm:$0xff]  ;;  %v51_v5 = vld [vmem:[%s701_s2 + $0x8] sm:$0xff]  ;;  %v52_v7 = vld [vmem:[%s701_s2 + $0x10] sm:$0xff] }
   0x3   :  { %v83_v4 = vmul.f32 %v255_v2, %v50_v1  ;;  %v84_v8 = vmul.f32 %v255_v2, %v51_v5  ;;  %v85_v9 = vmul.f32 %v255_v2, %v52_v7  ;;  %v21_v10 = vld [vmem:[%s700_s1 + $0x18] sm:$0xff]  ;;  %v22_v12 = vld [vmem:[%s700_s1 + $0x20] sm:$0xff]  ;;  %v23_v16 = vld [vmem:[%s700_s1 + $0x28] sm:$0xff] }
   0x4   :  { %v53_v11 = vld [vmem:[%s701_s2 + $0x18] sm:$0xff]  ;;  %v54_v15 = vld [vmem:[%s701_s2 + $0x20] sm:$0xff]  ;;  %v55_v17 = vld [vmem:[%s701_s2 + $0x28] sm:$0xff] }
   0x5   :  { %v115_v13 = vadd.f32 %v83_v4, %v18_v0  ;;  %v86_v14 = vmul.f32 %v255_v2, %v53_v11  ;;  %v116_v18 = vadd.f32 %v84_v8, %v19_v3  ;;  %v117_v19 = vadd.f32 %v85_v9, %v20_v6  ;;  %v24_v22 = vld [vmem:[%s700_s1 + $0x30] sm:$0xff] }
   0x6   :  { %v87_v20 = vmul.f32 %v255_v2, %v54_v15  ;;  %v88_v21 = vmul.f32 %v255_v2, %v55_v17  ;;  %v56_v23 = vld [vmem:[%s701_s2 + $0x30] sm:$0xff] }
   0x7   :  { %179 = vst [vmem:[%s702_s4] sm:$0xff] %v220_v24  ;;  %v118_v25 = vadd.f32 %v86_v14, %v21_v10  ;;  %v89_v26 = vmul.f32 %v255_v2, %v56_v23 }
   0x8   :  { %147 = vst [vmem:[%s703_s3] sm:$0xff] %v115_v13  ;;  %v119_v30 = vadd.f32 %v87_v20, %v22_v12  ;;  %v120_v31 = vadd.f32 %v88_v21, %v23_v16 }
   0x9   :  { %v121_v36 = vadd.f32 %v89_v26, %v24_v22 }
   0xe   :  { %v57_v28 = vld [vmem:[%s701_s2 + $0x38] sm:$0xff]  ;;  %v58_v29 = vld [vmem:[%s701_s2 + $0x40] sm:$0xff]  ;;  %v59_v35 = vld [vmem:[%s701_s2 + $0x48] sm:$0xff] }
   0xf   :  { %v25_v27 = vld [vmem:[%s700_s1 + $0x38] sm:$0xff]  ;;  %v90_v32 = vmul.f32 %v255_v2, %v57_v28  ;;  %v91_v34 = vmul.f32 %v255_v2, %v58_v29  ;;  %v92_v38 = vmul.f32 %v255_v2, %v59_v35  ;;  %v60_v39 = vld [vmem:[%s701_s2 + $0x50] sm:$0xff]  ;;  %v62_v45 = vld [vmem:[%s701_s2 + $0x60] sm:$0xff] }
  0x10   :  { %148 = vst [vmem:[%s703_s3 + $0x8] sm:$0xff] %v116_v18  ;;  %v61_v40 = vld [vmem:[%s701_s2 + $0x58] sm:$0xff]  ;;  %v93_v43 = vmul.f32 %v255_v2, %v60_v39  ;;  %v95_v48 = vmul.f32 %v255_v2, %v62_v45  ;;  %v63_v49 = vld [vmem:[%s701_s2 + $0x68] sm:$0xff]  ;;  %v64_v50 = vld [vmem:[%s701_s2 + $0x70] sm:$0xff] }
  0x11   :  { %v122_v41 = vadd.f32 %v90_v32, %v25_v27  ;;  %v94_v44 = vmul.f32 %v255_v2, %v61_v40  ;;  %v96_v53 = vmul.f32 %v255_v2, %v63_v49  ;;  %v65_v54 = vld [vmem:[%s701_s2 + $0x78] sm:$0xff]  ;;  %v97_v57 = vmul.f32 %v255_v2, %v64_v50  ;;  %v66_v58 = vld [vmem:[%s701_s2 + $0x80] sm:$0xff]  ;;  %v67_v59 = vld [vmem:[%s701_s2 + $0x88] sm:$0xff] }
  0x12   :  { %v98_v62 = vmul.f32 %v255_v2, %v65_v54  ;;  %v68_v63 = vld [vmem:[%s701_s2 + $0x90] sm:$0xff]  ;;  %v99_v3 = vmul.f32 %v255_v2, %v66_v58  ;;  %v69_v4 = vld [vmem:[%s701_s2 + $0x98] sm:$0xff]  ;;  %v100_v7 = vmul.f32 %v255_v2, %v67_v59  ;;  %v70_v8 = vld [vmem:[%s701_s2 + $0xa0] sm:$0xff] }
  0x13   :  { %v101_v11 = vmul.f32 %v255_v2, %v68_v63  ;;  %v71_v12 = vld [vmem:[%s701_s2 + $0xa8] sm:$0xff]  ;;  %v102_v15 = vmul.f32 %v255_v2, %v69_v4  ;;  %v72_v16 = vld [vmem:[%s701_s2 + $0xb0] sm:$0xff]  ;;  %v73_v20 = vld [vmem:[%s701_s2 + $0xb8] sm:$0xff] }
  0x14   :  { %v104_v23 = vmul.f32 %v255_v2, %v71_v12  ;;  %v105_v28 = vmul.f32 %v255_v2, %v72_v16  ;;  %v75_v29 = vld [vmem:[%s701_s2 + $0xc8] sm:$0xff]  ;;  %v106_v32 = vmul.f32 %v255_v2, %v73_v20  ;;  %v80_v49 = vld [vmem:[%s701_s2 + $0xf0] sm:$0xff] }
  0x15   :  { %v108_v40 = vmul.f32 %v255_v2, %v75_v29  ;;  %v79_v45 = vld [vmem:[%s701_s2 + $0xe8] sm:$0xff]  ;;  %v113_v59 = vmul.f32 %v255_v2, %v80_v49 }
  0x17   :  { %v26_v33 = vld [vmem:[%s700_s1 + $0x40] sm:$0xff] }
  0x18   :  { %149 = vst [vmem:[%s703_s3 + $0x10] sm:$0xff] %v117_v19  ;;  %v123_v46 = vadd.f32 %v91_v34, %v26_v33  ;;  %v103_v19 = vmul.f32 %v255_v2, %v70_v8  ;;  %v76_v33 = vld [vmem:[%s701_s2 + $0xd0] sm:$0xff] }
  0x1f   :  { %v27_v37 = vld [vmem:[%s700_s1 + $0x48] sm:$0xff] }
  0x20   :  { %150 = vst [vmem:[%s703_s3 + $0x18] sm:$0xff] %v118_v25  ;;  %v124_v51 = vadd.f32 %v92_v38, %v27_v37  ;;  %v74_v25 = vld [vmem:[%s701_s2 + $0xc0] sm:$0xff]  ;;  %v77_v37 = vld [vmem:[%s701_s2 + $0xd8] sm:$0xff] }
  0x27   :  { %v28_v42 = vld [vmem:[%s700_s1 + $0x50] sm:$0xff] }
  0x28   :  { %151 = vst [vmem:[%s703_s3 + $0x20] sm:$0xff] %v119_v30  ;;  %v125_v55 = vadd.f32 %v93_v43, %v28_v42 }
  0x2f   :  { %v29_v47 = vld [vmem:[%s700_s1 + $0x58] sm:$0xff] }
  0x30   :  { %152 = vst [vmem:[%s703_s3 + $0x28] sm:$0xff] %v120_v31  ;;  %v126_v60 = vadd.f32 %v94_v44, %v29_v47  ;;  %v109_v44 = vmul.f32 %v255_v2, %v76_v33 }
  0x37   :  { %v30_v52 = vld [vmem:[%s700_s1 + $0x60] sm:$0xff] }
  0x38   :  { %153 = vst [vmem:[%s703_s3 + $0x30] sm:$0xff] %v121_v36  ;;  %v127_v0 = vadd.f32 %v95_v48, %v30_v52  ;;  %v107_v36 = vmul.f32 %v255_v2, %v74_v25  ;;  %v110_v48 = vmul.f32 %v255_v2, %v77_v37 }
  0x3f   :  { %v31_v56 = vld [vmem:[%s700_s1 + $0x68] sm:$0xff] }
  0x40   :  { %154 = vst [vmem:[%s703_s3 + $0x38] sm:$0xff] %v122_v41  ;;  %v128_v5 = vadd.f32 %v96_v53, %v31_v56  ;;  %v78_v41 = vld [vmem:[%s701_s2 + $0xe0] sm:$0xff]  ;;  %v81_v53 = vld [vmem:[%s701_s2 + $0xf8] sm:$0xff]  ;;  %v112_v56 = vmul.f32 %v255_v2, %v79_v45 }
  0x41   :  { %v111_v52 = vmul.f32 %v255_v2, %v78_v41  ;;  %180 = vst [vmem:[%s702_s4 + $0x8] sm:$0xff] %v220_v24 }
  0x42   :  { %181 = vst [vmem:[%s702_s4 + $0x10] sm:$0xff] %v220_v24 }
  0x43   :  { %182 = vst [vmem:[%s702_s4 + $0x18] sm:$0xff] %v220_v24 }
  0x44   :  { %183 = vst [vmem:[%s702_s4 + $0x20] sm:$0xff] %v220_v24 }
  0x45   :  { %184 = vst [vmem:[%s702_s4 + $0x28] sm:$0xff] %v220_v24 }
  0x46   :  { %185 = vst [vmem:[%s702_s4 + $0x30] sm:$0xff] %v220_v24 }
  0x47   :  { %v32_v61 = vld [vmem:[%s700_s1 + $0x70] sm:$0xff]  ;;  %186 = vst [vmem:[%s702_s4 + $0x38] sm:$0xff] %v220_v24 }
  0x48   :  { %155 = vst [vmem:[%s703_s3 + $0x40] sm:$0xff] %v123_v46  ;;  %v129_v9 = vadd.f32 %v97_v57, %v32_v61 }
  0x49   :  { %187 = vst [vmem:[%s702_s4 + $0x40] sm:$0xff] %v220_v24 }
  0x4a   :  { %188 = vst [vmem:[%s702_s4 + $0x48] sm:$0xff] %v220_v24 }
  0x4b   :  { %189 = vst [vmem:[%s702_s4 + $0x50] sm:$0xff] %v220_v24 }
  0x4c   :  { %190 = vst [vmem:[%s702_s4 + $0x58] sm:$0xff] %v220_v24 }
  0x4d   :  { %191 = vst [vmem:[%s702_s4 + $0x60] sm:$0xff] %v220_v24 }
  0x4e   :  { %192 = vst [vmem:[%s702_s4 + $0x68] sm:$0xff] %v220_v24 }
  0x4f   :  { %v33_v1 = vld [vmem:[%s700_s1 + $0x78] sm:$0xff]  ;;  %193 = vst [vmem:[%s702_s4 + $0x70] sm:$0xff] %v220_v24 }
  0x50   :  { %156 = vst [vmem:[%s703_s3 + $0x48] sm:$0xff] %v124_v51  ;;  %v130_v13 = vadd.f32 %v98_v62, %v33_v1  ;;  %v114_v62 = vmul.f32 %v255_v2, %v81_v53 }
  0x51   :  { %194 = vst [vmem:[%s702_s4 + $0x78] sm:$0xff] %v220_v24 }
  0x52   :  { %195 = vst [vmem:[%s702_s4 + $0x80] sm:$0xff] %v220_v24 }
  0x53   :  { %196 = vst [vmem:[%s702_s4 + $0x88] sm:$0xff] %v220_v24 }
  0x54   :  { %197 = vst [vmem:[%s702_s4 + $0x90] sm:$0xff] %v220_v24 }
  0x55   :  { %198 = vst [vmem:[%s702_s4 + $0x98] sm:$0xff] %v220_v24 }
  0x56   :  { %199 = vst [vmem:[%s702_s4 + $0xa0] sm:$0xff] %v220_v24 }
  0x57   :  { %v34_v6 = vld [vmem:[%s700_s1 + $0x80] sm:$0xff]  ;;  %200 = vst [vmem:[%s702_s4 + $0xa8] sm:$0xff] %v220_v24 }
  0x58   :  { %157 = vst [vmem:[%s703_s3 + $0x50] sm:$0xff] %v125_v55  ;;  %v131_v17 = vadd.f32 %v99_v3, %v34_v6 }
  0x59   :  { %201 = vst [vmem:[%s702_s4 + $0xb0] sm:$0xff] %v220_v24 }
  0x5a   :  { %202 = vst [vmem:[%s702_s4 + $0xb8] sm:$0xff] %v220_v24 }
  0x5b   :  { %203 = vst [vmem:[%s702_s4 + $0xc0] sm:$0xff] %v220_v24 }
  0x5c   :  { %204 = vst [vmem:[%s702_s4 + $0xc8] sm:$0xff] %v220_v24 }
  0x5d   :  { %205 = vst [vmem:[%s702_s4 + $0xd0] sm:$0xff] %v220_v24 }
  0x5e   :  { %206 = vst [vmem:[%s702_s4 + $0xd8] sm:$0xff] %v220_v24 }
  0x5f   :  { %v35_v10 = vld [vmem:[%s700_s1 + $0x88] sm:$0xff]  ;;  %207 = vst [vmem:[%s702_s4 + $0xe0] sm:$0xff] %v220_v24 }
  0x60   :  { %158 = vst [vmem:[%s703_s3 + $0x58] sm:$0xff] %v126_v60  ;;  %v132_v21 = vadd.f32 %v100_v7, %v35_v10 }
  0x61   :  { %208 = vst [vmem:[%s702_s4 + $0xe8] sm:$0xff] %v220_v24 }
  0x62   :  { %209 = vst [vmem:[%s702_s4 + $0xf0] sm:$0xff] %v220_v24 }
  0x63   :  { %210 = vst [vmem:[%s702_s4 + $0xf8] sm:$0xff] %v220_v24 }
  0x67   :  { %v36_v14 = vld [vmem:[%s700_s1 + $0x90] sm:$0xff] }
  0x68   :  { %159 = vst [vmem:[%s703_s3 + $0x60] sm:$0xff] %v127_v0  ;;  %v133_v26 = vadd.f32 %v101_v11, %v36_v14 }
  0x6f   :  { %v37_v18 = vld [vmem:[%s700_s1 + $0x98] sm:$0xff] }
  0x70   :  { %160 = vst [vmem:[%s703_s3 + $0x68] sm:$0xff] %v128_v5  ;;  %v134_v30 = vadd.f32 %v102_v15, %v37_v18 }
  0x77   :  { %v38_v22 = vld [vmem:[%s700_s1 + $0xa0] sm:$0xff] }
  0x78   :  { %161 = vst [vmem:[%s703_s3 + $0x70] sm:$0xff] %v129_v9  ;;  %v135_v34 = vadd.f32 %v103_v19, %v38_v22 }
  0x7f   :  { %v39_v27 = vld [vmem:[%s700_s1 + $0xa8] sm:$0xff] }
  0x80   :  { %162 = vst [vmem:[%s703_s3 + $0x78] sm:$0xff] %v130_v13  ;;  %v136_v38 = vadd.f32 %v104_v23, %v39_v27 }
  0x87   :  { %v40_v31 = vld [vmem:[%s700_s1 + $0xb0] sm:$0xff] }
  0x88   :  { %163 = vst [vmem:[%s703_s3 + $0x80] sm:$0xff] %v131_v17  ;;  %v137_v42 = vadd.f32 %v105_v28, %v40_v31 }
  0x8f   :  { %v41_v35 = vld [vmem:[%s700_s1 + $0xb8] sm:$0xff] }
  0x90   :  { %164 = vst [vmem:[%s703_s3 + $0x88] sm:$0xff] %v132_v21  ;;  %v138_v46 = vadd.f32 %v106_v32, %v41_v35 }
  0x97   :  { %v42_v39 = vld [vmem:[%s700_s1 + $0xc0] sm:$0xff] }
  0x98   :  { %165 = vst [vmem:[%s703_s3 + $0x90] sm:$0xff] %v133_v26  ;;  %v139_v50 = vadd.f32 %v107_v36, %v42_v39 }
  0x9f   :  { %v43_v43 = vld [vmem:[%s700_s1 + $0xc8] sm:$0xff] }
  0xa0   :  { %166 = vst [vmem:[%s703_s3 + $0x98] sm:$0xff] %v134_v30  ;;  %v140_v54 = vadd.f32 %v108_v40, %v43_v43 }
  0xa7   :  { %v44_v47 = vld [vmem:[%s700_s1 + $0xd0] sm:$0xff] }
  0xa8   :  { %167 = vst [vmem:[%s703_s3 + $0xa0] sm:$0xff] %v135_v34  ;;  %v141_v57 = vadd.f32 %v109_v44, %v44_v47 }
  0xaf   :  { %v45_v51 = vld [vmem:[%s700_s1 + $0xd8] sm:$0xff] }
  0xb0   :  { %168 = vst [vmem:[%s703_s3 + $0xa8] sm:$0xff] %v136_v38  ;;  %v142_v60 = vadd.f32 %v110_v48, %v45_v51 }
  0xb7   :  { %v46_v55 = vld [vmem:[%s700_s1 + $0xe0] sm:$0xff] }
  0xb8   :  { %169 = vst [vmem:[%s703_s3 + $0xb0] sm:$0xff] %v137_v42  ;;  %v143_v63 = vadd.f32 %v111_v52, %v46_v55 }
  0xbf   :  { %v47_v58 = vld [vmem:[%s700_s1 + $0xe8] sm:$0xff] }
  0xc0   :  { %170 = vst [vmem:[%s703_s3 + $0xb8] sm:$0xff] %v138_v46  ;;  %v144_v1 = vadd.f32 %v112_v56, %v47_v58 }
  0xc7   :  { %v48_v61 = vld [vmem:[%s700_s1 + $0xf0] sm:$0xff] }
  0xc8   :  { %171 = vst [vmem:[%s703_s3 + $0xc0] sm:$0xff] %v139_v50  ;;  %v145_v3 = vadd.f32 %v113_v59, %v48_v61 }
  0xcf   :  { %v49_v0 = vld [vmem:[%s700_s1 + $0xf8] sm:$0xff] }
  0xd0   :  { %172 = vst [vmem:[%s703_s3 + $0xc8] sm:$0xff] %v140_v54  ;;  %v146_v2 = vadd.f32 %v114_v62, %v49_v0 }
  0xd1   :  { %173 = vst [vmem:[%s703_s3 + $0xd0] sm:$0xff] %v141_v57 }
  0xd2   :  { %174 = vst [vmem:[%s703_s3 + $0xd8] sm:$0xff] %v142_v60 }
  0xd3   :  { %175 = vst [vmem:[%s703_s3 + $0xe0] sm:$0xff] %v143_v63 }
  0xd4   :  { %176 = vst [vmem:[%s703_s3 + $0xe8] sm:$0xff] %v144_v1 }
  0xd5   :  { %177 = vst [vmem:[%s703_s3 + $0xf0] sm:$0xff] %v145_v3 }
  0xd6   :  { %178 = vst [vmem:[%s703_s3 + $0xf8] sm:$0xff] %v146_v2 }

</bundles_post_ra>
